<compile_context>
chip_gen: v5e
topology: v5e:2x2
jax: 0.10.0
libtpu: 0.0.40
codegen_flags: <defaults>
</compile_context>

<pallas_src>
import jax
import jax.numpy as jnp
from jax.experimental import pallas as pl
from jax.experimental.pallas import tpu as pltpu


def repadapter_kernel(x_ref, wa_ref, wb_ref, o_ref):
    # x_ref : (NB, C, TL)  batch sub-block of pixel tiles (channels on sublanes,
    #                      pixels on lanes)
    # wa_ref: (Hd, C)      conv_A weight (left-multiply)
    # wb_ref: (C, Hd)      grouped conv_B as block-diagonal, `scale` folded in
    wa = wa_ref[...]
    wb = wb_ref[...]
    for b in range(x_ref.shape[0]):                       # static, small (<=8)
        x = x_ref[b]                                       # (C, TL) io dtype
        # conv_A: 1x1 conv == channel matmul (f32 MXU accumulation)
        h = jnp.dot(wa, x, preferred_element_type=jnp.float32)        # (Hd, TL)
        # dropout: identity (eval mode)
        # conv_B (grouped) as a single block-diagonal matmul
        y = jnp.dot(wb, h.astype(wb.dtype),
                    preferred_element_type=jnp.float32)               # (C, TL)
        # residual add in the I/O dtype (no f32 x-cast / long-lived f32 temp)
        o_ref[b] = y.astype(o_ref.dtype) + x


def _vmem_budget():
    """(footprint_budget_bytes, vmem_limit_bytes), generation-aware."""
    phys = 128 * 1024 * 1024
    try:
        info = pltpu.get_tpu_info()
        phys = int(getattr(info, "vmem_capacity_bytes", phys))
    except Exception:
        pass
    if phys <= 64 * 1024 * 1024:
        # v7x-class: 64 MiB physical per TensorCore -> stay well under it.
        return 36 * 1024 * 1024, 48 * 1024 * 1024
    # v5e / v6e: 128 MiB physical; raise the scoped limit well above defaults.
    return 56 * 1024 * 1024, 72 * 1024 * 1024


def _pick_tiles(n, c, hw, itemsize, budget_bytes):
    """Pick (batch sub-block nb, lane tile tile_l) against the real footprint."""

    def round_up_128(v):
        return ((v + 127) // 128) * 128

    def footprint(nb, tl):
        # 2x double-buffered input tile + 2x double-buffered output tile
        # (I/O dtype) + one (C, TL) f32 matmul-output temporary.
        return nb * c * tl * 4 * itemsize + c * tl * 4

    # ---- lane tile: full H*W if it fits, else largest 128-multiple tile ----
    if footprint(1, hw) <= budget_bytes:
        tile_l = hw
    else:
        per_lane = c * (4 * itemsize + 4)
        # max(128, ...): 128 is the floor; vmem_limit carries headroom if
        # c*per_lane*128 alone already exceeds the footprint budget.
        max_lanes = max(128, (budget_bytes // per_lane) // 128 * 128)
        # Prefer a near-even 128-multiple split to avoid a tiny ragged tail.
        num_tiles = -(-hw // max_lanes)
        tile_l = min(max_lanes, round_up_128(-(-hw // num_tiles)))

    # ---- batch sub-block: only when one (C, H*W) slab fits in a single step --
    nb = 1
    if tile_l == hw and n > 1:
        target_step_bytes = 2 * 1024 * 1024          # >= ~2 MiB moved per step
        want = -(-target_step_bytes // (2 * c * hw * itemsize))
        max_nb_budget = max(1, (budget_bytes - c * hw * 4) // (c * hw * 4 * itemsize))
        want = min(want, max_nb_budget)
        want = min(want, max(1, n // 2))             # keep >= 2 steps (2 TCs on v7x)
        for d in range(max(1, want), 0, -1):         # largest divisor of n <= want
            if n % d == 0:
                nb = d
                break

    # ---- guarantee >= 2 grid steps so both v7x TensorCores get work ----------
    num_steps = (-(-n // nb)) * (-(-hw // tile_l))
    if num_steps < 2 and hw >= 256:
        tile_l = round_up_128(-(-hw // 2))

    return nb, tile_l


def repadapter2d(x_nchw, conv_a_w, conv_b_w, *, groups=2, scale=1.0):
    """x_nchw: (N, C, H, W); conv_a_w: (Hd, C, 1, 1); conv_b_w: (C, Hd//G, 1, 1)."""
    n, c, h, w = x_nchw.shape
    hd = conv_a_w.shape[0]
    hg = hd // groups
    cg = c // groups
    hw = h * w
    dtype = x_nchw.dtype
    itemsize = jnp.dtype(dtype).itemsize

    # ---- plain-JAX glue: free reshape + O(weights) preprocessing -------------
    x3d = x_nchw.reshape(n, c, hw)                            # contiguous, free
    wa = conv_a_w[:, :, 0, 0].astype(dtype)                   # (Hd, C)
    # Grouped conv_B -> block-diagonal (C, Hd); fold `scale` into the weight.
    blocks = conv_b_w[:, :, 0, 0].reshape(groups, cg, hg).astype(jnp.float32)
    wb_bd = jnp.zeros((c, hd), dtype=jnp.float32)
    for g in range(groups):                                   # small static loop
        wb_bd = wb_bd.at[g * cg:(g + 1) * cg, g * hg:(g + 1) * hg].set(blocks[g])
    wb_bd = (wb_bd * scale).astype(dtype)                     # (C, Hd)

    budget, vmem_limit = _vmem_budget()
    nb, tile_l = _pick_tiles(n, c, hw, itemsize, budget)
    grid = (pl.cdiv(n, nb), pl.cdiv(hw, tile_l))

    out3d = pl.pallas_call(
        repadapter_kernel,
        out_shape=jax.ShapeDtypeStruct((n, c, hw), dtype),
        grid_spec=pltpu.PrefetchScalarGridSpec(
            num_scalar_prefetch=0,
            grid=grid,
            in_specs=[
                pl.BlockSpec((nb, c, tile_l), lambda i, j: (i, 0, j)),
                pl.BlockSpec((hd, c), lambda i, j: (0, 0)),   # resident weight
                pl.BlockSpec((c, hd), lambda i, j: (0, 0)),   # resident weight
            ],
            out_specs=pl.BlockSpec((nb, c, tile_l), lambda i, j: (i, 0, j)),
        ),
        compiler_params=pltpu.CompilerParams(
            dimension_semantics=("parallel", "parallel"),
            vmem_limit_bytes=vmem_limit),
    )(x3d, wa, wb_bd)

    return out3d.reshape(n, c, h, w)


def repadapter2d_ref(x_nchw, conv_a_w, conv_b_w, *, groups=2, scale=1.0):
    """Pure-JAX reference via an independent code path (NHWC + per-group loop)."""
    n, c, h, w = x_nchw.shape
    hd = conv_a_w.shape[0]
    hg = hd // groups
    cg = c // groups
    x2d = jnp.transpose(x_nchw, (0, 2, 3, 1)).reshape(n * h * w, c).astype(jnp.float32)
    wa = jnp.transpose(conv_a_w[:, :, 0, 0], (1, 0)).astype(jnp.float32)    # (C, Hd)
    wb = conv_b_w[:, :, 0, 0].astype(jnp.float32)                           # (C, Hg)
    hmid = x2d @ wa                                                         # (P, Hd)
    outs = []
    for g in range(groups):
        hblk = hmid[:, g * hg:(g + 1) * hg]                                 # (P, Hg)
        wblk = wb[g * cg:(g + 1) * cg, :]                                   # (Cg, Hg)
        outs.append(hblk @ wblk.T)                                          # (P, Cg)
    y = jnp.concatenate(outs, axis=-1) * scale + x2d
    return jnp.transpose(y.reshape(n, h, w, c), (0, 3, 1, 2))


if __name__ == "__main__":
    master_key = jax.random.PRNGKey(0)

    def run_case(case_idx, n, c, h, w, hid, groups, scale):
        key = jax.random.fold_in(master_key, case_idx)
        kx, ka, kb = jax.random.split(key, 3)
        x = jax.random.normal(kx, (n, c, h, w), dtype=jnp.float32)
        # conv_A: xavier_uniform for (hid, c, 1, 1); fan_in=c, fan_out=hid.
        bound = (6.0 / (c + hid)) ** 0.5
        conv_a_w = jax.random.uniform(ka, (hid, c, 1, 1), jnp.float32, -bound, bound)
        # conv_B: PyTorch init is zeros (output == x); use small random values so
        # the kernel compute is actually exercised.
        conv_b_w = 0.02 * jax.random.normal(kb, (c, hid // groups, 1, 1), jnp.float32)

        ref = repadapter2d_ref(x, conv_a_w, conv_b_w, groups=groups, scale=scale)

        # f32 I/O path: strict check against the pure-JAX reference.
        out = jax.block_until_ready(
            repadapter2d(x, conv_a_w, conv_b_w, groups=groups, scale=scale))
        assert out.shape == (n, c, h, w)
        assert jnp.allclose(out, ref, atol=1e-5, rtol=1e-5), \
            f"f32 mismatch vs reference (case {case_idx})"

        # bf16 I/O path (recommended production path): looser tolerance; the
        # conv_A output is downcast to bf16 before the second matmul (f32 accum).
        out_bf16 = jax.block_until_ready(
            repadapter2d(x.astype(jnp.bfloat16), conv_a_w, conv_b_w,
                         groups=groups, scale=scale))
        assert out_bf16.dtype == jnp.bfloat16
        assert jnp.allclose(out_bf16.astype(jnp.float32), ref, atol=5e-2, rtol=5e-2), \
            f"bf16 mismatch vs reference (case {case_idx})"

    # Baseline small shape consistent with the module.
    run_case(0, n=2, c=16, h=16, w=16, hid=8, groups=2, scale=1.0)
    # Batch sub-blocking path (nb > 1) with a non-128-multiple H*W (ViT-like 14x14).
    run_case(1, n=8, c=32, h=14, w=14, hid=8, groups=2, scale=1.0)
    # Single-image input: lane split keeps >= 2 grid steps (v7x two TensorCores).
    run_case(2, n=1, c=16, h=16, w=16, hid=8, groups=2, scale=1.0)

    print("KERNEL_OK")
</pallas_src>

<mosaic_0001>
module attributes {stable_mosaic.version = 11 : i64} {
  func.func @repadapter_kernel(%arg0: i32, %arg1: i32, %arg2: memref<1x16x256xf32, #tpu.memory_space<vmem>>, %arg3: memref<8x16xf32, #tpu.memory_space<vmem>>, %arg4: memref<16x8xf32, #tpu.memory_space<vmem>>, %arg5: memref<1x16x256xf32, #tpu.memory_space<vmem>>) attributes {dimension_semantics = [#tpu.dimension_semantics<parallel>, #tpu.dimension_semantics<parallel>], iteration_bounds = array<i64: 2, 1>, scalar_prefetch = 0 : i64, scratch_operands = 0 : i64, tpu.core_type = #tpu.core_type<tc>, window_params = [{transform_indices = @transform_0, window_bounds = array<i64: 1, 16, 256>}, {pipeline_mode = #tpu.pipeline_mode<synchronous>, transform_indices = @transform_1, window_bounds = array<i64: 8, 16>}, {pipeline_mode = #tpu.pipeline_mode<synchronous>, transform_indices = @transform_2, window_bounds = array<i64: 16, 8>}, {transform_indices = @transform_3, window_bounds = array<i64: 1, 16, 256>}]} {
    %c0 = arith.constant 0 : index
    %c0_0 = arith.constant 0 : index
    %0 = vector.load %arg3[%c0, %c0_0] : memref<8x16xf32, #tpu.memory_space<vmem>>, vector<8x16xf32>
    %c0_1 = arith.constant 0 : index
    %c0_2 = arith.constant 0 : index
    %1 = vector.load %arg4[%c0_1, %c0_2] : memref<16x8xf32, #tpu.memory_space<vmem>>, vector<16x8xf32>
    %c0_3 = arith.constant 0 : index
    %c0_4 = arith.constant 0 : index
    %c0_5 = arith.constant 0 : index
    %2 = vector.load %arg2[%c0_3, %c0_4, %c0_5] : memref<1x16x256xf32, #tpu.memory_space<vmem>>, vector<1x16x256xf32>
    %3 = vector.shape_cast %2 : vector<1x16x256xf32> to vector<16x256xf32>
    %cst = arith.constant dense<0.000000e+00> : vector<8x256xf32>
    %4 = tpu.matmul %0, %3, %cst {dimension_numbers = #tpu.dot_dimension_numbers<[1], [0], [0], [1], [0, 0, 1, 1], [], []>} : vector<8x16xf32>, vector<16x256xf32>, vector<8x256xf32> -> vector<8x256xf32>
    %cst_6 = arith.constant dense<0.000000e+00> : vector<16x256xf32>
    %5 = tpu.matmul %1, %4, %cst_6 {dimension_numbers = #tpu.dot_dimension_numbers<[1], [0], [0], [1], [0, 0, 1, 1], [], []>} : vector<16x8xf32>, vector<8x256xf32>, vector<16x256xf32> -> vector<16x256xf32>
    %6 = arith.addf %5, %3 : vector<16x256xf32>
    %c0_7 = arith.constant 0 : index
    %c0_8 = arith.constant 0 : index
    %c0_9 = arith.constant 0 : index
    %7 = vector.load %arg5[%c0_7, %c0_8, %c0_9] : memref<1x16x256xf32, #tpu.memory_space<vmem>>, vector<1x16x256xf32>
    %8 = vector.shape_cast %7 : vector<1x16x256xf32> to vector<16x256xf32>
    %9 = vector.shape_cast %6 : vector<16x256xf32> to vector<1x16x256xf32>
    tpu.vector_store %arg5[%c0_7, %c0_8, %c0_9], %9 {strides = array<i32>} : memref<1x16x256xf32, #tpu.memory_space<vmem>>, vector<1x16x256xf32>,
    return
  }
  func.func @transform_0(%arg0: i32, %arg1: i32) -> (i32, i32, i32) {
    %c0_i32 = arith.constant 0 : i32
    %c0_i32_0 = arith.constant 0 : i32
    return %arg0, %c0_i32, %arg1 : i32, i32, i32
  }
  func.func @transform_1(%arg0: i32, %arg1: i32) -> (i32, i32) {
    %c0_i32 = arith.constant 0 : i32
    %c0_i32_0 = arith.constant 0 : i32
    %c0_i32_1 = arith.constant 0 : i32
    return %c0_i32, %c0_i32_0 : i32, i32
  }
  func.func @transform_2(%arg0: i32, %arg1: i32) -> (i32, i32) {
    %c0_i32 = arith.constant 0 : i32
    %c0_i32_0 = arith.constant 0 : i32
    %c0_i32_1 = arith.constant 0 : i32
    return %c0_i32, %c0_i32_0 : i32, i32
  }
  func.func @transform_3(%arg0: i32, %arg1: i32) -> (i32, i32, i32) {
    %c0_i32 = arith.constant 0 : i32
    %c0_i32_0 = arith.constant 0 : i32
    return %arg0, %c0_i32, %arg1 : i32, i32, i32
  }
}

</mosaic_0001>

<bundles_post_ra>
// kernel: tpu_custom_call.1
= control target key start
LH: loop header
LB: loop body
LE: loop exit
PB: predicated region body
PF: predicated region fallthrough
CT: control target
= control target key end

     0   :  { %8 = vsyncpa [#allocation3], 0  ;;  %s784_s0 = inlined_call_operand.hbm [shape: f32[2,16,256], index: 0, kind: input, shape index: {}]   ;;  %s785_s1 = inlined_call_operand.vmem [shape: f32[8,16], index: 1, kind: input, shape index: {}]   ;;  %s786_s2 = inlined_call_operand.vmem [shape: f32[16,8], index: 2, kind: input, shape index: {}]   ;;  %s787_s3 = inlined_call_operand.hbm [shape: f32[2,16,256], index: 3, kind: output, shape index: {}]  }
   0x1   :  { %10 = vsyncpa [#allocation3 + $0x1], 0 }
   0x2   :  { %11 = vsyncpa [#allocation4], 0 }
   0x3   :  { %13 = vsyncpa [#allocation4 + $0x1], 0  ;;  %s651_s12 = smov 0   ;;  %s653_s13 = smov 0  }
   0x4   :  { %s655_s14 = smov 0   ;;  %s657_s15 = smov 0  }
   0x5   :  { %s659_s16 = smov 0   ;;  %s661_s17 = smov 0  }
   0x6 LB: > { %s424_s18 = sadd.s32 4294967295, %s625_s17   ;;  %s425_s19 = sadd.s32 4294967294, %s625_s17   ;;  %s625_s17 = sphi %s661_s17, %s19_s17   ;;  %s621_s16 = sphi %s659_s16, %s796_s16   ;;  %s617_s15 = sphi %s657_s15, %s795_s15   ;;  %s613_s14 = sphi %s655_s14, %s794_s14   ;;  %s609_s13 = sphi %s653_s13, %s793_s13   ;;  %s605_s12 = sphi %s651_s12, %s792_s12  }
   0x7   : > { %s31_s20 = sadd.s32 1, %s621_s16  ;;  %s40_s21 = sadd.s32 1, %s613_s14 }
   0x8   : > { %p33_p0 = scmp.ge.s32.totalorder %s31_s20, 2  ;;  %p47_p1 = scmp.ne.s32.totalorder %s613_s14, %s609_s13 }
   0x9   : > { %p48_p2 = scmp.eq.s32.totalorder %s625_s17, 0  ;;  %p53_p3 = scmp.ne.s32.totalorder %s609_s13, %s605_s12 }
   0xa   : > { %s798_s20 = smov (%p33_p0, %s31_s20), 0  ;;  %p54_p5 = scmp.eq.s32.totalorder %s424_s18, 0 }
   0xb   : > { %p692_p4 = por %p48_p2, %p47_p1  ;;  %s35_s23 = ssub.s32 %s621_s16, %s798_s20 }
   0xc   : > { %p121_p6 = scmp.eq.s32.totalorder %s424_s18, 1  ;;  %p38_p7 = scmp.eq.s32.totalorder %s35_s23, 0 }
   0xd   : > { %p698_p8 = por %p54_p5, %p53_p3  ;;  %p127_p10 = scmp.eq.s32.totalorder %s425_s19, 1 }
   0xe   : > { %p702_p9 = por %p121_p6, %p47_p1  ;;  %p427_p12 = scmp.ge.s32.totalorder %s625_s17, 2 }
   0xf   : > { %s707_s26 = scalar_select %p38_p7, %s613_s14, %s40_s21  }
  0x10   : > { %p709_p11 = por %p127_p10, %p53_p3  ;;  %p459_p13 = scmp.lt.s32.totalorder %s625_s17, 2 }
  0x11   : > { %s153_s28 = sand.u32 1, %s613_s14   ;;  %s445_s30 = sshll.u32 %s621_s16, 5 }
  0x12   : > { %s428_s29 = sshll.u32 %s153_s28, 5  ;;  %s164_s6 = scalar_lea.hbm %s784_s0, %s445_s30 }
  0x13   : > { %s157_s7 = scalar_lea.vmem [#allocation2], %s428_s29  ;;  %s165_s9 = sshll.u32 %s164_s6, 4  ;;  %s166_s9 = int_to_ptr.hbm [resolvable:$true] %s165_s9 }
  0x14   : > { %s167_s8 = sshll.u32 %s157_s7, 4  ;;  %p452_p0 = pnand %p459_p13, %p692_p4  ;;  %s168_s8 = int_to_ptr.vmem [resolvable:$true] %s167_s8 }
  0x15   : > { %p431_p1 = scmp.ge.s32.totalorder %s625_s17, 1  ;;  %s154_s10 = scalar_lea.sflag [#allocation3], %s153_s28 }
  0x16   : > { %s627_s11 = smov 256   ;;  %s628_s18 = smov 16  }
  0x17   : > { %454 = dma.hbm_to_vmem [thread:$0]  (!%p452_p0), %s166_s9, 512, %s168_s8, %s154_s10, %s627_s11, %s627_s11, %s628_s18  }
  0x18   : > { %p175_p2 = scmp.lt.s32.totalorder %s625_s17, 3 }
  0x1a   : > { %p176_p3 = pnand %p431_p1, %p175_p2 }
  0x1b   : > { %s725_s19 = sand.u32 (!%p176_p3), 1, %s609_s13  }
  0x1c   : > { %179 = sbr.rel (%p176_p3) target bundleno = 312 (0x138), region = 32  ;;  %s432_s21 = sshll.u32 (!%p176_p3), %s725_s19, 5 }
  0x1d   : > { %s182_s23 = scalar_lea.sflag (!%p176_p3), [#allocation3], %s725_s19  ;;  %s185_s22 = scalar_lea.vmem (!%p176_p3), [#allocation2], %s432_s21 }
  0x21   : > { %596 = dma.done.wait (%p698_p8), %s182_s23, 512  }
  0x22   : > { %598 = vsyncadd (%p698_p8), %s182_s23, 4294966784  ;;  %v216_v0 = vld [vmem:[%s185_s22 + $0x10] sm:$0xff]  ;;  %v217_v1 = vld [vmem:[%s185_s22 + $0x18] sm:$0xff]  ;;  %vm218_vm0 = vcmask 130048   ;;  %vm262_vm1 = vcmask 64512   ;;  %s446_s6 = sshll.u32 %s617_s15, 5 }
  0x23   : > { %v214_v2 = vld [vmem:[%s185_s22] sm:$0xff]  ;;  %236 = vmatpush.msra.mxu0 %v216_v0  ;;  %256 = vmatpush.msra.mxu1 %v217_v1  ;;  %v215_v3 = vld [vmem:[%s185_s22 + $0x8] sm:$0xff]  ;;  %s208_s7 = scalar_lea.vmem [#allocation5], %s432_s21  ;;  %s333_s10 = scalar_lea.hbm %s787_s3, %s446_s6 }
  0x24   : > { %v211_v4 = vld [vmem:[%s785_s1] sm:$0xff]  ;;  %v213_v8 = vld [vmem:[%s786_s2 + $0x8] sm:$0xff]  ;;  %s334_s11 = sshll.u32 %s208_s7, 4  ;;  %s336_s18 = sshll.u32 %s333_s10, 4  ;;  %s335_s11 = int_to_ptr.vmem [resolvable:$true] %s334_s11  ;;  %s337_s18 = int_to_ptr.hbm [resolvable:$true] %s336_s18 }
  0x25   : > { %237 = vmatpush.msra.mxu0 %v214_v2  ;;  %257 = vmatpush.msra.mxu1 %v215_v3  ;;  %v212_v5 = vld [vmem:[%s786_s2] sm:$0xff]  ;;  %s320_s15 = scalar_lea.sflag [#allocation4], %s725_s19  ;;  %s557_s23 = sshra.s32 %s337_s18, 4  ;;  %s558_s23 = int_to_ptr.hbm [resolvable:$true] %s557_s23 }
  0x26   : > { %434 = vmatmul.msk.f32.vlgmr.msra.gmra.mxu0 %vm218_vm0, %v211_v4  ;;  %435 = vmatmul.msk.f32.vlgmr.msra.gmra.mxu1 %vm218_vm0, %v211_v4  ;;  %s559_s21 = scalar_lea.hbm %s558_s23, 32  ;;  %s563_s29 = scalar_lea.hbm %s787_s3, 64 }
  0x27   : > { %p560_p4 = scmp.ne.s32.totalorder %s558_s23, %s559_s21  ;;  %p564_p7 = scmp.lt.s32.totalorder %s558_s23, %s787_s3 }
  0x28   : > { %p565_p8 = scmp.lt.s32.totalorder %s563_s29, %s559_s21 }
  0x29   : > { %p561_p5 = pnand %p560_p4, %p702_p9 }
  0x2a   : > { %p566_p10 = por %p565_p8, %p564_p7 }
  0x2b   : > { %p562_p6 = pneg %p561_p5 }
  0x2d   : > { %p567_p13 = pnand %p566_p10, %p562_p6 }
  0xa3   : > { %v239_v6 = vpop.f32.mrf.mxu0  ;;  %v259_v7 = vpop.f32.mrf.mxu1 }
  0xa4   : > { %284 = vmatpush.msra.mxu2 %v239_v6  ;;  %307 = vmatpush.msra.mxu3 %v259_v7 }
  0xa5   : > { %436 = vmatmul.msk.f32.vlgmr.msra.gmra.mxu2 %vm262_vm1, %v212_v5  ;;  %438 = vmatmul.msk.f32.vlgmr.msra.gmra.mxu3 %vm262_vm1, %v212_v5 }
  0xad   : > { %437 = vmatmul.msk.f32.gmra.mxu2 %vm262_vm1, %v213_v8  ;;  %439 = vmatmul.msk.f32.gmra.mxu3 %vm262_vm1, %v213_v8 }
 0x128   : > { %v286_v9 = vpop.f32.mrf.mxu2  ;;  %v309_v10 = vpop.f32.mrf.mxu3 }
 0x129   : > { %v287_v11 = vadd.f32 %v286_v9, %v214_v2  ;;  %v310_v12 = vadd.f32 %v309_v10, %v215_v3 }
 0x12b   : > { %315 = vst [vmem:[%s208_s7] sm:$0xff] %v287_v11 }
 0x12c   : > { %316 = vst [vmem:[%s208_s7 + $0x8] sm:$0xff] %v310_v12 }
 0x130   : > { %v289_v13 = vpop.f32.mrf.mxu2  ;;  %v312_v14 = vpop.f32.mrf.mxu3 }
 0x131   : > { %v290_v15 = vadd.f32 %v289_v13, %v216_v0  ;;  %v313_v16 = vadd.f32 %v312_v14, %v217_v1 }
 0x133   : > { %317 = vst [vmem:[%s208_s7 + $0x10] sm:$0xff] %v290_v15 }
 0x134   : > { %318 = vst [vmem:[%s208_s7 + $0x18] sm:$0xff] %v313_v16 }
 0x135   : > { %570 = shalt.err (!%p567_p13)
}
 0x136   : > { %s629_s19 = smov 256   ;;  %s630_s24 = smov 16  }
 0x137   : > { %449 = dma.vmem_to_hbm [thread:$0]  (%p702_p9), %s335_s11, 512, %s337_s18, %s320_s15, %s629_s19, %s629_s19, %s630_s24  }
 0x138 PF: > { %s351_s5 = sand.u32 1, %s605_s12   ;;  %p456_p0 = pnand %p427_p12, %p709_p11 }
 0x139   : > { %s352_s6 = scalar_lea.sflag [#allocation4], %s351_s5 }
 0x13a   : > { %p457_p1 = pneg %p456_p0 }
 0x13c   : > { %600 = dma.done.wait (%p457_p1), %s352_s6, 512  }
 0x13d   : > { %602 = vsyncadd (%p457_p1), %s352_s6, 4294966784  ;;  %s19_s17 = sadd.s32 1, %s625_s17   ;;  %s792_s12 = smov %s609_s13 }
 0x13e   : > { %p16_p2 = scmp.ge.s32.totalorder %s19_s17, 4   ;;  %s793_s13 = smov %s613_s14 }
 0x13f   : > { %s794_s14 = smov %s707_s26  ;;  %s795_s15 = smov %s621_s16 }
 0x140   : > { %s796_s16 = smov %s798_s20  ;;  %18 = sbr.rel (!%p16_p2) target bundleno = 6 (0x6), region = 77 }
 0x145   :  { %358 = vsyncpa [#allocation3], 1 }
 0x146   :  { %360 = vsyncpa [#allocation3 + $0x1], 1 }
 0x147   :  { %361 = vsyncpa [#allocation4], 1 }
 0x148   :  { %363 = vsyncpa [#allocation4 + $0x1], 1 }

</bundles_post_ra>
